<compile_context>
chip_gen: v6e
topology: v6e:2x2x1
jax: 0.10.0
libtpu: 0.0.40
codegen_flags: <defaults>
</compile_context>

<pallas_src>
import functools

import jax
import jax.numpy as jnp
from jax import lax
from jax.experimental import pallas as pl
from jax.experimental.pallas import tpu as pltpu

EPS = 1e-5          # matches TtRMSNorm default; pass eps=... if the config differs

_LANE = 128
_SUBLANE = 8
_TARGET_BLOCK_BYTES = 4 * 1024 * 1024   # ~4 MiB block -> near HBM roofline plateau


def _round_up(n, m):
    return ((n + m - 1) // m) * m


def _vmem_budgets():
    """(max_buffered_bytes, vmem_limit_bytes) sized for the actual part."""
    vmem_cap = 64 * 1024 * 1024          # conservative default (v7x per-TC)
    try:
        vmem_cap = int(pltpu.get_tpu_info().vmem_capacity_bytes)
    except Exception:
        pass
    if vmem_cap >= 128 * 1024 * 1024:    # v5e / v6e
        return 48 * 1024 * 1024, 96 * 1024 * 1024
    return 24 * 1024 * 1024, 48 * 1024 * 1024


def _choose_row_tile(rows, hidden, dtype_bytes, max_buffered_bytes):
    """Largest row tile ~_TARGET_BLOCK_BYTES that double-buffers in VMEM and
    never exceeds the real row count (no padded-row HBM traffic)."""
    row_bytes = max(hidden * dtype_bytes, 1)
    # sub-32-bit dtypes pack 2+ rows per sublane -> keep tile a multiple of 16
    align = _SUBLANE if dtype_bytes >= 4 else 16
    rt = max(align, _TARGET_BLOCK_BYTES // row_bytes)
    cap = max(align, (max_buffered_bytes // 4) // row_bytes)  # 2 in + 2 out bufs
    rt = min(rt, cap)
    rt = min(rt, _round_up(rows, align))      # never overshoot the row count
    rt = max(align, (rt // align) * align)
    return rt, align


def _x_block_spec(row_tile, hidden, deep):
    """Input/output BlockSpec; deeper pipelining only for tiny-block cases."""
    if deep:
        try:
            return pl.BlockSpec((row_tile, hidden), lambda i: (i, 0),
                                pipeline_mode=pl.Buffered(3))
        except TypeError:
            pass  # older/newer API without pipeline_mode -> default double buffer
    return pl.BlockSpec((row_tile, hidden), lambda i: (i, 0))


def _rmsnorm_kernel(x_ref, w_ref, o_ref, *, eps, inv_hidden):
    # x_ref: (TM, H) tile of rows; w_ref: (1, H) weight row resident in VMEM.
    x = x_ref[...]
    xf = x.astype(jnp.float32)
    # sum / original-hidden -> mean(x^2); reduction always in f32.
    ms = jnp.sum(xf * xf, axis=-1, keepdims=True) * inv_hidden     # (TM, 1)
    inv = lax.rsqrt(ms + eps)                                       # (TM, 1)
    if x.dtype == jnp.float32:
        # f32 path (also correct/safe on v5e which lacks bf16 VALU/EUP).
        o_ref[...] = (xf * inv) * w_ref[...].astype(jnp.float32)
    else:
        # Narrow dtypes: keep the scale multiply in the native dtype to halve
        # VPU traffic / vreg pressure on v6e / v7x (both have bf16 VALU).
        o_ref[...] = (x * inv.astype(x.dtype)) * w_ref[...].astype(x.dtype)


def rmsnorm(x, weight, *, eps=EPS, row_tile=None):
    """x: (..., hidden), weight: (hidden,) -> same shape/dtype as x."""
    orig_shape = x.shape
    hidden = orig_shape[-1]
    x2d = x.reshape(-1, hidden)                 # free reshape of leading dims
    rows = x2d.shape[0]
    dtype_bytes = jnp.dtype(x.dtype).itemsize

    max_buffered, vmem_limit = _vmem_budgets()
    if row_tile is None:
        row_tile, align = _choose_row_tile(rows, hidden, dtype_bytes, max_buffered)
    else:
        align = _SUBLANE if dtype_bytes >= 4 else 16

    grid_steps = pl.cdiv(rows, row_tile)
    w2d = weight.reshape(1, hidden)

    # Deep pipelining only matters when hidden is so wide that the tile clamps
    # to the alignment minimum and there are many grid steps.
    deep = (row_tile == align) and (grid_steps > 4)
    x_spec = _x_block_spec(row_tile, hidden, deep)
    o_spec = _x_block_spec(row_tile, hidden, deep)

    cost = pl.CostEstimate(
        flops=3 * rows * hidden,
        transcendentals=rows,
        bytes_accessed=2 * rows * hidden * dtype_bytes
        + hidden * jnp.dtype(weight.dtype).itemsize,
    )

    kernel = functools.partial(_rmsnorm_kernel, eps=eps, inv_hidden=1.0 / hidden)

    out = pl.pallas_call(
        kernel,
        out_shape=jax.ShapeDtypeStruct((rows, hidden), x.dtype),
        grid_spec=pltpu.PrefetchScalarGridSpec(
            num_scalar_prefetch=0,
            grid=(grid_steps,),
            in_specs=[
                x_spec,
                pl.BlockSpec((1, hidden), lambda i: (0, 0)),   # resident weight row
            ],
            out_specs=o_spec,
        ),
        compiler_params=pltpu.CompilerParams(
            dimension_semantics=("parallel",),     # shard row blocks across TCs (v7x)
            vmem_limit_bytes=vmem_limit,
        ),
        cost_estimate=cost,
    )(x2d, w2d)

    return out.reshape(orig_shape)


def rmsnorm_ref(x, weight, eps=EPS):
    xf = x.astype(jnp.float32)
    ms = jnp.mean(xf * xf, axis=-1, keepdims=True)
    return (xf * lax.rsqrt(ms + eps) * weight.astype(jnp.float32)).astype(x.dtype)


if __name__ == "__main__":
    key = jax.random.PRNGKey(0)

    def run_case(rows, hidden, dtype, atol, rtol, subkey):
        kx, kw = jax.random.split(subkey)
        x = jax.random.normal(kx, (rows, hidden), dtype=jnp.float32).astype(dtype)
        w = (1.0 + 0.01 * jax.random.normal(kw, (hidden,), dtype=jnp.float32)).astype(dtype)
        out = jax.block_until_ready(rmsnorm(x, w))
        ref = rmsnorm_ref(x, w)
        assert out.shape == x.shape and out.dtype == x.dtype
        assert jnp.allclose(out.astype(jnp.float32), ref.astype(jnp.float32),
                            atol=atol, rtol=rtol), f"mismatch rows={rows} hidden={hidden} {dtype}"

    keys = jax.random.split(key, 3)
    # Module-consistent small shape: rows = batch*seq, hidden on the lane axis.
    run_case(2 * 8, 128, jnp.float32, 1e-5, 1e-5, keys[0])
    # Ragged: hidden not a multiple of 128, rows not a multiple of the row tile.
    run_case(10, 96, jnp.float32, 1e-5, 1e-5, keys[1])
    # bf16 path (native-dtype final scale multiply).
    run_case(12, 256, jnp.bfloat16, 5e-2, 5e-2, keys[2])

    print("KERNEL_OK")
</pallas_src>

<mosaic_0001>
module attributes {stable_mosaic.version = 11 : i64} {
  func.func @_rmsnorm_kernel(%arg0: i32, %arg1: memref<16x128xf32, #tpu.memory_space<vmem>>, %arg2: memref<1x128xf32, #tpu.memory_space<vmem>>, %arg3: memref<16x128xf32, #tpu.memory_space<vmem>>) attributes {dimension_semantics = [#tpu.dimension_semantics<parallel>], iteration_bounds = array<i64: 1>, scalar_prefetch = 0 : i64, scratch_operands = 0 : i64, tpu.core_type = #tpu.core_type<tc>, window_params = [{transform_indices = @transform_0, window_bounds = array<i64: 16, 128>}, {pipeline_mode = #tpu.pipeline_mode<synchronous>, transform_indices = @transform_1, window_bounds = array<i64: 1, 128>}, {transform_indices = @transform_2, window_bounds = array<i64: 16, 128>}]} {
    %c0 = arith.constant 0 : index
    %c0_0 = arith.constant 0 : index
    %0 = vector.load %arg1[%c0, %c0_0] : memref<16x128xf32, #tpu.memory_space<vmem>>, vector<16x128xf32>
    %1 = arith.mulf %0, %0 : vector<16x128xf32>
    %cst = arith.constant dense<0.000000e+00> : vector<16xf32>
    %2 = vector.multi_reduction <add>, %1, %cst [1] : vector<16x128xf32> to vector<16xf32>
    %3 = vector.shape_cast %2 : vector<16xf32> to vector<16x1xf32>
    %cst_1 = arith.constant 7.812500e-03 : f32
    %4 = vector.broadcast %cst_1 : f32 to vector<16x1xf32>
    %5 = arith.mulf %3, %4 : vector<16x1xf32>
    %cst_2 = arith.constant 9.99999974E-6 : f32
    %6 = vector.broadcast %cst_2 : f32 to vector<16x1xf32>
    %7 = arith.addf %5, %6 : vector<16x1xf32>
    %8 = math.rsqrt %7 : vector<16x1xf32>
    %9 = vector.broadcast %8 : vector<16x1xf32> to vector<16x128xf32>
    %10 = arith.mulf %0, %9 : vector<16x128xf32>
    %c0_3 = arith.constant 0 : index
    %c0_4 = arith.constant 0 : index
    %11 = vector.load %arg2[%c0_3, %c0_4] : memref<1x128xf32, #tpu.memory_space<vmem>>, vector<1x128xf32>
    %12 = vector.broadcast %11 : vector<1x128xf32> to vector<16x128xf32>
    %13 = arith.mulf %10, %12 : vector<16x128xf32>
    %c0_5 = arith.constant 0 : index
    %c0_6 = arith.constant 0 : index
    %14 = vector.load %arg3[%c0_5, %c0_6] : memref<16x128xf32, #tpu.memory_space<vmem>>, vector<16x128xf32>
    tpu.vector_store %arg3[%c0_5, %c0_6], %13 {strides = array<i32>} : memref<16x128xf32, #tpu.memory_space<vmem>>, vector<16x128xf32>,
    return
  }
  func.func @transform_0(%arg0: i32) -> (i32, i32) {
    %c0_i32 = arith.constant 0 : i32
    %c0_i32_0 = arith.constant 0 : i32
    return %arg0, %c0_i32 : i32, i32
  }
  func.func @transform_1(%arg0: i32) -> (i32, i32) {
    %c0_i32 = arith.constant 0 : i32
    %c0_i32_0 = arith.constant 0 : i32
    %c0_i32_1 = arith.constant 0 : i32
    return %c0_i32, %c0_i32_0 : i32, i32
  }
  func.func @transform_2(%arg0: i32) -> (i32, i32) {
    %c0_i32 = arith.constant 0 : i32
    %c0_i32_0 = arith.constant 0 : i32
    return %arg0, %c0_i32 : i32, i32
  }
}

</mosaic_0001>

<bundles_post_ra>
// kernel: tpu_custom_call.1
= control target key start
LH: loop header
LB: loop body
LE: loop exit
PB: predicated region body
PF: predicated region fallthrough
CT: control target
= control target key end

     0   :  { %7 = vsyncpa [#allocation3], 0  ;;  %s157_s0 = inlined_call_operand.hbm [shape: f32[16,128], index: 0, kind: input, shape index: {}]   ;;  %s158_s1 = inlined_call_operand.vmem [shape: f32[1,128], index: 1, kind: input, shape index: {}]   ;;  %s159_s2 = inlined_call_operand.hbm [shape: f32[16,128], index: 2, kind: output, shape index: {}]  }
   0x1   :  { %8 = vsyncpa [#allocation4], 0  ;;  %s123_s9 = smov [#allocation2]  }
   0x2   :  { %s14_s10 = sshll.u32 %s123_s9, 4  ;;  %s15_s10 = int_to_ptr.vmem [resolvable:$true] %s14_s10 }
   0x3   :  { %s87_s11 = scalar_lea.vmem %s15_s10, 256  ;;  %p92_p1 = scmp.lt.s32.totalorder %s15_s10, %s15_s10 }
   0x4   :  { %p88_p0 = scmp.ne.s32.totalorder %s15_s10, %s87_s11  ;;  %p93_p2 = scmp.lt.s32.totalorder %s87_s11, %s87_s11 }
   0x6   :  { %p94_p3 = por %p93_p2, %p92_p1 }
   0x8   :  { %p95_p4 = pnand %p94_p3, %p88_p0 }
   0xa   :  { %98 = shalt.err (!%p95_p4)
}
   0xb   :  { %s124_s12 = smov 128   ;;  %s125_s13 = smov 8  }
   0xc   :  { %20 = dma.hbm_to_vmem [thread:$0]  %s157_s0, 256, %s15_s10, [#allocation3], %s124_s12, %s124_s12, %s125_s13  }
   0xd   :  { %119 = dma.done.wait [#allocation3], 256  }
   0xe   :  { %120 = vsyncadd [#allocation3], 4294967040  ;;  %v26_v0 = vld [vmem:[#allocation2] sm:$0xff]  ;;  %v27_v1 = vld [vmem:[#allocation2 + $0x8] sm:$0xff]  ;;  %s126_s0 = smov [#allocation5]  }
   0xf   :  { %v28_v2 = vmul.f32 %v26_v0, %v26_v0  ;;  %v29_v3 = vmul.f32 %v27_v1, %v27_v1  ;;  %v70_v11 = vld [vmem:[%s158_s1] ss:$0 sm:$0xff]  ;;  %s58_s18 = sshll.u32 %s126_s0, 4  ;;  %s59_s18 = int_to_ptr.vmem [resolvable:$true] %s58_s18 }
  0x10   :  { %s99_s19 = scalar_lea.vmem %s59_s18, 256  ;;  %p104_p6 = scmp.lt.s32.totalorder %s59_s18, %s59_s18 }
  0x11   :  { %30 = vadd.xlane.f32.xlu0 %v28_v2  ;;  %p100_p5 = scmp.ne.s32.totalorder %s59_s18, %s99_s19  ;;  %p105_p7 = scmp.lt.s32.totalorder %s99_s19, %s99_s19 }
  0x13   :  { %p106_p8 = por %p105_p7, %p104_p6 }
  0x15   :  { %32 = vadd.xlane.f32.xlu0 %v29_v3  ;;  %p107_p9 = pnand %p106_p8, %p100_p5 }
  0x9a   :  { %v31_v4 = vpop.xlane.xlu0 %30 }
  0x9b   :  { %v34_v5 = vmul.f32 0.0078125, %v31_v4 }
  0x9d   :  { %v36_v6 = vadd.f32 1e-05, %v34_v5 }
  0x9e   :  { %v33_v7 = vpop.xlane.xlu0 %32 }
  0x9f   :  { %75 = vrsqrt.f32 %v36_v6  ;;  %v35_v8 = vmul.f32 0.0078125, %v33_v7 }
  0xa1   :  { %v37_v9 = vadd.f32 1e-05, %v35_v8 }
  0xa3   :  { %77 = vrsqrt.f32 %v37_v9 }
  0xac   :  { %v76_v10 = vpop.eup %75 }
  0xad   :  { %v40_v12 = vmul.f32 %v76_v10, %v26_v0 }
  0xaf   :  { %v49_v13 = vmul.f32 %v70_v11, %v40_v12 }
  0xb0   :  { %v78_v14 = vpop.eup %77 }
  0xb1   :  { %v41_v15 = vmul.f32 %v78_v14, %v27_v1  ;;  %51 = vst [vmem:[#allocation5] sm:$0xff] %v49_v13 }
  0xb3   :  { %v50_v16 = vmul.f32 %v70_v11, %v41_v15 }
  0xb5   :  { %52 = vst [vmem:[#allocation5 + $0x8] sm:$0xff] %v50_v16 }
  0xb6   :  { %110 = shalt.err (!%p107_p9)
}
  0xb7   :  { %64 = dma.vmem_to_hbm [thread:$0]  %s59_s18, 256, %s159_s2, [#allocation4], %s124_s12, %s124_s12, %s125_s13  }
  0xb8   :  { %121 = dma.done.wait [#allocation4], 256  }
  0xb9   :  { %122 = vsyncadd [#allocation4], 4294967040 }
  0xba   :  { %68 = vsyncpa [#allocation3], 1 }
  0xbb   :  { %69 = vsyncpa [#allocation4], 1 }

</bundles_post_ra>
